<compile_context>
chip_gen: v6e
topology: v6e:2x2x1
jax: 0.10.0
libtpu: 0.0.40
codegen_flags: <defaults>
</compile_context>

<pallas_src>
import functools

import jax
import jax.numpy as jnp
from jax.experimental import pallas as pl
from jax.experimental.pallas import tpu as pltpu

_EPS = 1e-8  # torch.cosine_similarity eps


def _round_up(x, m):
    return ((x + m - 1) // m) * m


# ----------------------------------------------------------------------------
# Fused kernel: per edge-tile -> cosine features -> ms-weighting -> MLP -> pred
# ----------------------------------------------------------------------------
def _make_fused_kernel(num_hidden, num_emb_layers, d1, eps):
    eps_sq = float(eps) * float(eps)

    def kernel(*refs):
        ga_ref, gb_ref, wv1_ref, wv2_ref = refs[:4]
        mlp_refs = refs[4:-2]          # W0, b0, ..., Wp, bp (torch layouts)
        out_ref = refs[-2]             # (1, TILE_E)
        sim_ref = refs[-1]             # VMEM scratch (L, TILE_E)

        # Fold the torch ms-loop: per-embedding-layer mean over the ms heads.
        wm1 = jnp.mean(wv1_ref[...], axis=1, keepdims=True)   # [L, 1]
        wm2 = jnp.mean(wv2_ref[...], axis=1, keepdims=True)   # [L, 1]

        def cos_row(a, b):
            # a, b: [D, T] — features on sublanes, edges on lanes.
            dot = jnp.sum(a * b, axis=0, keepdims=True)                       # [1, T]
            nsq = (jnp.sum(a * a, axis=0, keepdims=True) *
                   jnp.sum(b * b, axis=0, keepdims=True))
            # torch.cosine_similarity: dot / max(|a|*|b|, eps)  (EUP rsqrt)
            return dot * jax.lax.rsqrt(jnp.maximum(nsq, eps_sq))

        for l in range(num_emb_layers):
            ea = ga_ref[l]                                   # [D1+D2, T]
            eb = gb_ref[l]
            cos1 = cos_row(ea[:d1, :], eb[:d1, :])           # view 1
            cos2 = cos_row(ea[d1:, :], eb[d1:, :])           # view 2
            sim_ref[pl.ds(l, 1), :] = (wm1[l:l + 1, :] * cos1 +
                                       wm2[l:l + 1, :] * cos2)

        # MLP (torch-native [out, in] weights; edges stay on lanes).
        h = sim_ref[...]                                     # [L, T]
        for i in range(num_hidden):
            w = mlp_refs[2 * i][...]                         # [H_i, H_{i-1}]
            b = mlp_refs[2 * i + 1][...]                     # [H_i, 1]
            h = jnp.maximum(
                jnp.dot(w, h, preferred_element_type=jnp.float32) + b, 0.0)
        wp = mlp_refs[2 * num_hidden][...]                   # [1, H_last]
        bp = mlp_refs[2 * num_hidden + 1][...]               # [1, 1]
        out_ref[...] = jnp.dot(wp, h, preferred_element_type=jnp.float32) + bp

    return kernel


# ----------------------------------------------------------------------------
# Wrapper: shared lane-dense gather + one fused pallas_call over edge tiles.
# ----------------------------------------------------------------------------
@functools.partial(jax.jit, static_argnames=("tile_e",))
def mlp_mia_white_weight_sim2_m_forward(edge_list, z1_trains, z2_trains, params,
                                        tile_e=512):
    L, _, D1 = z1_trains.shape
    assert z2_trains.shape[0] == L
    D2 = z2_trains.shape[2]
    E = edge_list.shape[0]

    # Edge-tile size: multiple of 128 (lane width); per-step VMEM stays small
    # even on v7x (64 MiB physical / 32 MiB scoped default).
    tile_e = max(128, (int(tile_e) // 128) * 128)
    tile_e = min(tile_e, _round_up(E, 128))
    e_pad = _round_up(E, tile_e)

    n1 = edge_list[:, 0].astype(jnp.int32)
    n2 = edge_list[:, 1].astype(jnp.int32)
    if e_pad != E:
        n1 = jnp.pad(n1, (0, e_pad - E))   # pad with node 0; results sliced off
        n2 = jnp.pad(n2, (0, e_pad - E))

    # Shared feature-major gather for both views:
    # [L, D1+D2, N] --take(edges)--> [L, D1+D2, E_pad] (edges on lanes).
    zcat = jnp.concatenate([jnp.swapaxes(z1_trains, 1, 2),
                            jnp.swapaxes(z2_trains, 1, 2)], axis=1)
    ga = jnp.take(zcat, n1, axis=2)
    gb = jnp.take(zcat, n2, axis=2)

    # Resident parameters (torch layouts: weights [out, in], biases [out, 1]).
    wv1 = jnp.transpose(params["weight_vec1"]).astype(jnp.float32)   # [L, ms]
    wv2 = jnp.transpose(params["weight_vec2"]).astype(jnp.float32)   # [L, ms]
    resident = [wv1, wv2]
    for w, b in zip(params["mlp_weights"], params["mlp_biases"]):
        resident += [w, b]
    resident += [params["wp"], params["bp"]]

    d_tot = D1 + D2
    gather_spec = pl.BlockSpec((L, d_tot, tile_e), lambda i: (0, 0, i))

    def resident_spec(arr):
        n = arr.ndim
        return pl.BlockSpec(arr.shape, lambda i: (0,) * n)

    out = pl.pallas_call(
        _make_fused_kernel(len(params["mlp_weights"]), L, D1, _EPS),
        out_shape=jax.ShapeDtypeStruct((1, e_pad), jnp.float32),
        grid=(e_pad // tile_e,),
        in_specs=[gather_spec, gather_spec] + [resident_spec(a) for a in resident],
        out_specs=pl.BlockSpec((1, tile_e), lambda i: (0, i)),
        scratch_shapes=[pltpu.VMEM((L, tile_e), jnp.float32)],
        compiler_params=pltpu.CompilerParams(
            dimension_semantics=("parallel",)),
    )(ga, gb, *resident)

    return out[0, :E]   # prediction.view(-1)


# ----------------------------------------------------------------------------
# Deterministic parameter init (shapes from __init__; torch zeroes all biases).
# ----------------------------------------------------------------------------
def init_params(key, num_emb_layers, ms, hidden_layer):
    L = num_emb_layers                       # lay_1_dim == number of emb layers
    n_lin = len(hidden_layer) + 1
    keys = jax.random.split(key, 2 + n_lin)

    def xavier_uniform(k, fan_out, fan_in):
        bound = (6.0 / (fan_in + fan_out)) ** 0.5
        return jax.random.uniform(k, (fan_out, fan_in), jnp.float32, -bound, bound)

    mlp_weights, mlp_biases = [], []
    prev = L
    for i, h in enumerate(hidden_layer):
        mlp_weights.append(xavier_uniform(keys[2 + i], h, prev))   # [out, in]
        mlp_biases.append(jnp.zeros((h, 1), jnp.float32))
        prev = h

    # predict layer ~ kaiming_uniform(nonlinearity='sigmoid'): bound=sqrt(3/fan_in)
    bound = (3.0 / prev) ** 0.5
    wp = jax.random.uniform(keys[2 + len(hidden_layer)], (1, prev),
                            jnp.float32, -bound, bound)

    return {
        "weight_vec1": jax.random.normal(keys[0], (ms, L), jnp.float32),
        "weight_vec2": jax.random.normal(keys[1], (ms, L), jnp.float32),
        "mlp_weights": mlp_weights,
        "mlp_biases": mlp_biases,
        "wp": wp,
        "bp": jnp.zeros((1, 1), jnp.float32),
    }


# ----------------------------------------------------------------------------
# Pure-jnp reference (mirrors the torch forward) for a correctness check.
# ----------------------------------------------------------------------------
def reference_forward(edge_list, z1, z2, params):
    n1 = edge_list[:, 0]
    n2 = edge_list[:, 1]

    def cos_per_layer(z):
        a = z[:, n1, :]                               # [L, E, D]
        b = z[:, n2, :]
        dot = jnp.sum(a * b, axis=2)
        nsq = jnp.sum(a * a, axis=2) * jnp.sum(b * b, axis=2)
        return dot / jnp.sqrt(jnp.maximum(nsq, _EPS * _EPS))   # [L, E]

    embs_1 = cos_per_layer(z1).T                      # [E, L]
    embs_2 = cos_per_layer(z2).T

    ms = params["weight_vec1"].shape[0]
    sim1 = jnp.zeros_like(embs_1)
    sim2 = jnp.zeros_like(embs_2)
    for m in range(ms):                               # mirrors the torch ms-loop
        sim1 = sim1 + params["weight_vec1"][m] * embs_1 / ms
        sim2 = sim2 + params["weight_vec2"][m] * embs_2 / ms
    sim = sim1 + sim2

    hi = jax.lax.Precision.HIGHEST                    # f32 ground truth
    h = sim
    for w, b in zip(params["mlp_weights"], params["mlp_biases"]):
        h = jnp.maximum(jnp.dot(h, w.T, precision=hi) + b.T, 0.0)
    pred = jnp.dot(h, params["wp"].T, precision=hi) + params["bp"].T
    return pred.reshape(-1)


if __name__ == "__main__":
    key = jax.random.PRNGKey(0)
    k_z1, k_z2, k_e, k_p = jax.random.split(key, 4)

    # Small shapes consistent with the module (lay_1_dim == L).
    L = 4            # embedding layers / views == lay_1_dim
    N = 32           # number of nodes
    D1 = D2 = 16     # embedding feature dims
    E = 10           # number of edges
    ms = 3           # weight heads
    hidden_layer = [32, 16]
    # dropout = 0.5 -> identity at inference (see TODO at top)

    z1_trains = jax.random.normal(k_z1, (L, N, D1), jnp.float32)
    z2_trains = jax.random.normal(k_z2, (L, N, D2), jnp.float32)
    edge_list = jax.random.randint(k_e, (E, 2), 0, N, dtype=jnp.int32)

    params = init_params(k_p, L, ms, hidden_layer)

    pred = mlp_mia_white_weight_sim2_m_forward(edge_list, z1_trains, z2_trains, params)
    pred = jax.block_until_ready(pred)

    ref = reference_forward(edge_list, z1_trains, z2_trains, params)
    assert pred.shape == (E,), pred.shape
    # default-precision MXU matmuls (bf16 inputs, f32 accum) vs f32 reference
    assert jnp.allclose(pred, ref, atol=5e-2, rtol=5e-2), (pred, ref)

    print("KERNEL_OK")
</pallas_src>

<mosaic_0001>
module attributes {stable_mosaic.version = 11 : i64} {
  func.func @kernel(%arg0: i32, %arg1: memref<4x32x128xf32, #tpu.memory_space<vmem>>, %arg2: memref<4x32x128xf32, #tpu.memory_space<vmem>>, %arg3: memref<4x3xf32, #tpu.memory_space<vmem>>, %arg4: memref<4x3xf32, #tpu.memory_space<vmem>>, %arg5: memref<32x4xf32, #tpu.memory_space<vmem>>, %arg6: memref<32x1xf32, #tpu.memory_space<vmem>>, %arg7: memref<16x32xf32, #tpu.memory_space<vmem>>, %arg8: memref<16x1xf32, #tpu.memory_space<vmem>>, %arg9: memref<1x16xf32, #tpu.memory_space<vmem>>, %arg10: memref<1x1xf32, #tpu.memory_space<vmem>>, %arg11: memref<1x128xf32, #tpu.memory_space<vmem>>, %arg12: memref<4x128xf32, #tpu.memory_space<vmem>>) attributes {dimension_semantics = [#tpu.dimension_semantics<parallel>], iteration_bounds = array<i64: 1>, scalar_prefetch = 0 : i64, scratch_operands = 1 : i64, tpu.core_type = #tpu.core_type<tc>, window_params = [{transform_indices = @transform_0, window_bounds = array<i64: 4, 32, 128>}, {transform_indices = @transform_1, window_bounds = array<i64: 4, 32, 128>}, {pipeline_mode = #tpu.pipeline_mode<synchronous>, transform_indices = @transform_2, window_bounds = array<i64: 4, 3>}, {pipeline_mode = #tpu.pipeline_mode<synchronous>, transform_indices = @transform_3, window_bounds = array<i64: 4, 3>}, {pipeline_mode = #tpu.pipeline_mode<synchronous>, transform_indices = @transform_4, window_bounds = array<i64: 32, 4>}, {pipeline_mode = #tpu.pipeline_mode<synchronous>, transform_indices = @transform_5, window_bounds = array<i64: 32, 1>}, {pipeline_mode = #tpu.pipeline_mode<synchronous>, transform_indices = @transform_6, window_bounds = array<i64: 16, 32>}, {pipeline_mode = #tpu.pipeline_mode<synchronous>, transform_indices = @transform_7, window_bounds = array<i64: 16, 1>}, {pipeline_mode = #tpu.pipeline_mode<synchronous>, transform_indices = @transform_8, window_bounds = array<i64: 1, 16>}, {pipeline_mode = #tpu.pipeline_mode<synchronous>, transform_indices = @transform_9, window_bounds = array<i64: 1, 1>}, {transform_indices = @transform_10, window_bounds = array<i64: 1, 128>}]} {
    %c0 = arith.constant 0 : index
    %c0_0 = arith.constant 0 : index
    %0 = vector.load %arg3[%c0, %c0_0] : memref<4x3xf32, #tpu.memory_space<vmem>>, vector<4x3xf32>
    %cst = arith.constant dense<0.000000e+00> : vector<4xf32>
    %1 = vector.multi_reduction <add>, %0, %cst [1] : vector<4x3xf32> to vector<4xf32>
    %2 = vector.shape_cast %1 : vector<4xf32> to vector<4x1xf32>
    %cst_1 = arith.constant 3.000000e+00 : f32
    %3 = vector.broadcast %cst_1 : f32 to vector<4x1xf32>
    %4 = arith.divf %2, %3 : vector<4x1xf32>
    %c0_2 = arith.constant 0 : index
    %c0_3 = arith.constant 0 : index
    %5 = vector.load %arg4[%c0_2, %c0_3] : memref<4x3xf32, #tpu.memory_space<vmem>>, vector<4x3xf32>
    %cst_4 = arith.constant dense<0.000000e+00> : vector<4xf32>
    %6 = vector.multi_reduction <add>, %5, %cst_4 [1] : vector<4x3xf32> to vector<4xf32>
    %7 = vector.shape_cast %6 : vector<4xf32> to vector<4x1xf32>
    %cst_5 = arith.constant 3.000000e+00 : f32
    %8 = vector.broadcast %cst_5 : f32 to vector<4x1xf32>
    %9 = arith.divf %7, %8 : vector<4x1xf32>
    %c0_6 = arith.constant 0 : index
    %c0_7 = arith.constant 0 : index
    %c0_8 = arith.constant 0 : index
    %10 = vector.load %arg1[%c0_6, %c0_7, %c0_8] : memref<4x32x128xf32, #tpu.memory_space<vmem>>, vector<1x32x128xf32>
    %11 = vector.shape_cast %10 : vector<1x32x128xf32> to vector<32x128xf32>
    %c0_9 = arith.constant 0 : index
    %c0_10 = arith.constant 0 : index
    %c0_11 = arith.constant 0 : index
    %12 = vector.load %arg2[%c0_9, %c0_10, %c0_11] : memref<4x32x128xf32, #tpu.memory_space<vmem>>, vector<1x32x128xf32>
    %13 = vector.shape_cast %12 : vector<1x32x128xf32> to vector<32x128xf32>
    %14 = vector.extract_strided_slice %11 {offsets = [0, 0], sizes = [16, 128], strides = [1, 1]} : vector<32x128xf32> to vector<16x128xf32>
    %15 = vector.extract_strided_slice %13 {offsets = [0, 0], sizes = [16, 128], strides = [1, 1]} : vector<32x128xf32> to vector<16x128xf32>
    %16 = arith.mulf %14, %15 : vector<16x128xf32>
    %cst_12 = arith.constant dense<0.000000e+00> : vector<128xf32>
    %17 = vector.multi_reduction <add>, %16, %cst_12 [0] : vector<16x128xf32> to vector<128xf32>
    %18 = vector.shape_cast %17 : vector<128xf32> to vector<1x128xf32>
    %19 = arith.mulf %14, %14 : vector<16x128xf32>
    %cst_13 = arith.constant dense<0.000000e+00> : vector<128xf32>
    %20 = vector.multi_reduction <add>, %19, %cst_13 [0] : vector<16x128xf32> to vector<128xf32>
    %21 = vector.shape_cast %20 : vector<128xf32> to vector<1x128xf32>
    %22 = arith.mulf %15, %15 : vector<16x128xf32>
    %cst_14 = arith.constant dense<0.000000e+00> : vector<128xf32>
    %23 = vector.multi_reduction <add>, %22, %cst_14 [0] : vector<16x128xf32> to vector<128xf32>
    %24 = vector.shape_cast %23 : vector<128xf32> to vector<1x128xf32>
    %25 = arith.mulf %21, %24 : vector<1x128xf32>
    %cst_15 = arith.constant 1.000000e-16 : f32
    %26 = vector.broadcast %cst_15 : f32 to vector<1x128xf32>
    %27 = arith.maximumf %25, %26 : vector<1x128xf32>
    %28 = math.rsqrt %27 : vector<1x128xf32>
    %29 = arith.mulf %18, %28 : vector<1x128xf32>
    %30 = vector.extract_strided_slice %11 {offsets = [16, 0], sizes = [16, 128], strides = [1, 1]} : vector<32x128xf32> to vector<16x128xf32>
    %31 = vector.extract_strided_slice %13 {offsets = [16, 0], sizes = [16, 128], strides = [1, 1]} : vector<32x128xf32> to vector<16x128xf32>
    %32 = arith.mulf %30, %31 : vector<16x128xf32>
    %cst_16 = arith.constant dense<0.000000e+00> : vector<128xf32>
    %33 = vector.multi_reduction <add>, %32, %cst_16 [0] : vector<16x128xf32> to vector<128xf32>
    %34 = vector.shape_cast %33 : vector<128xf32> to vector<1x128xf32>
    %35 = arith.mulf %30, %30 : vector<16x128xf32>
    %cst_17 = arith.constant dense<0.000000e+00> : vector<128xf32>
    %36 = vector.multi_reduction <add>, %35, %cst_17 [0] : vector<16x128xf32> to vector<128xf32>
    %37 = vector.shape_cast %36 : vector<128xf32> to vector<1x128xf32>
    %38 = arith.mulf %31, %31 : vector<16x128xf32>
    %cst_18 = arith.constant dense<0.000000e+00> : vector<128xf32>
    %39 = vector.multi_reduction <add>, %38, %cst_18 [0] : vector<16x128xf32> to vector<128xf32>
    %40 = vector.shape_cast %39 : vector<128xf32> to vector<1x128xf32>
    %41 = arith.mulf %37, %40 : vector<1x128xf32>
    %cst_19 = arith.constant 1.000000e-16 : f32
    %42 = vector.broadcast %cst_19 : f32 to vector<1x128xf32>
    %43 = arith.maximumf %41, %42 : vector<1x128xf32>
    %44 = math.rsqrt %43 : vector<1x128xf32>
    %45 = arith.mulf %34, %44 : vector<1x128xf32>
    %46 = vector.extract_strided_slice %4 {offsets = [0, 0], sizes = [1, 1], strides = [1, 1]} : vector<4x1xf32> to vector<1x1xf32>
    %47 = vector.broadcast %46 : vector<1x1xf32> to vector<1x128xf32>
    %48 = arith.mulf %47, %29 : vector<1x128xf32>
    %49 = vector.extract_strided_slice %9 {offsets = [0, 0], sizes = [1, 1], strides = [1, 1]} : vector<4x1xf32> to vector<1x1xf32>
    %50 = vector.broadcast %49 : vector<1x1xf32> to vector<1x128xf32>
    %51 = arith.mulf %50, %45 : vector<1x128xf32>
    %52 = arith.addf %48, %51 : vector<1x128xf32>
    %c0_20 = arith.constant 0 : index
    %c0_21 = arith.constant 0 : index
    %53 = vector.load %arg12[%c0_20, %c0_21] : memref<4x128xf32, #tpu.memory_space<vmem>>, vector<1x128xf32>
    tpu.vector_store %arg12[%c0_20, %c0_21], %52 {strides = array<i32>} : memref<4x128xf32, #tpu.memory_space<vmem>>, vector<1x128xf32>,
    %c1 = arith.constant 1 : index
    %c0_22 = arith.constant 0 : index
    %c0_23 = arith.constant 0 : index
    %54 = vector.load %arg1[%c1, %c0_22, %c0_23] : memref<4x32x128xf32, #tpu.memory_space<vmem>>, vector<1x32x128xf32>
    %55 = vector.shape_cast %54 : vector<1x32x128xf32> to vector<32x128xf32>
    %c1_24 = arith.constant 1 : index
    %c0_25 = arith.constant 0 : index
    %c0_26 = arith.constant 0 : index
    %56 = vector.load %arg2[%c1_24, %c0_25, %c0_26] : memref<4x32x128xf32, #tpu.memory_space<vmem>>, vector<1x32x128xf32>
    %57 = vector.shape_cast %56 : vector<1x32x128xf32> to vector<32x128xf32>
    %58 = vector.extract_strided_slice %55 {offsets = [0, 0], sizes = [16, 128], strides = [1, 1]} : vector<32x128xf32> to vector<16x128xf32>
    %59 = vector.extract_strided_slice %57 {offsets = [0, 0], sizes = [16, 128], strides = [1, 1]} : vector<32x128xf32> to vector<16x128xf32>
    %60 = arith.mulf %58, %59 : vector<16x128xf32>
    %cst_27 = arith.constant dense<0.000000e+00> : vector<128xf32>
    %61 = vector.multi_reduction <add>, %60, %cst_27 [0] : vector<16x128xf32> to vector<128xf32>
    %62 = vector.shape_cast %61 : vector<128xf32> to vector<1x128xf32>
    %63 = arith.mulf %58, %58 : vector<16x128xf32>
    %cst_28 = arith.constant dense<0.000000e+00> : vector<128xf32>
    %64 = vector.multi_reduction <add>, %63, %cst_28 [0] : vector<16x128xf32> to vector<128xf32>
    %65 = vector.shape_cast %64 : vector<128xf32> to vector<1x128xf32>
    %66 = arith.mulf %59, %59 : vector<16x128xf32>
    %cst_29 = arith.constant dense<0.000000e+00> : vector<128xf32>
    %67 = vector.multi_reduction <add>, %66, %cst_29 [0] : vector<16x128xf32> to vector<128xf32>
    %68 = vector.shape_cast %67 : vector<128xf32> to vector<1x128xf32>
    %69 = arith.mulf %65, %68 : vector<1x128xf32>
    %cst_30 = arith.constant 1.000000e-16 : f32
    %70 = vector.broadcast %cst_30 : f32 to vector<1x128xf32>
    %71 = arith.maximumf %69, %70 : vector<1x128xf32>
    %72 = math.rsqrt %71 : vector<1x128xf32>
    %73 = arith.mulf %62, %72 : vector<1x128xf32>
    %74 = vector.extract_strided_slice %55 {offsets = [16, 0], sizes = [16, 128], strides = [1, 1]} : vector<32x128xf32> to vector<16x128xf32>
    %75 = vector.extract_strided_slice %57 {offsets = [16, 0], sizes = [16, 128], strides = [1, 1]} : vector<32x128xf32> to vector<16x128xf32>
    %76 = arith.mulf %74, %75 : vector<16x128xf32>
    %cst_31 = arith.constant dense<0.000000e+00> : vector<128xf32>
    %77 = vector.multi_reduction <add>, %76, %cst_31 [0] : vector<16x128xf32> to vector<128xf32>
    %78 = vector.shape_cast %77 : vector<128xf32> to vector<1x128xf32>
    %79 = arith.mulf %74, %74 : vector<16x128xf32>
    %cst_32 = arith.constant dense<0.000000e+00> : vector<128xf32>
    %80 = vector.multi_reduction <add>, %79, %cst_32 [0] : vector<16x128xf32> to vector<128xf32>
    %81 = vector.shape_cast %80 : vector<128xf32> to vector<1x128xf32>
    %82 = arith.mulf %75, %75 : vector<16x128xf32>
    %cst_33 = arith.constant dense<0.000000e+00> : vector<128xf32>
    %83 = vector.multi_reduction <add>, %82, %cst_33 [0] : vector<16x128xf32> to vector<128xf32>
    %84 = vector.shape_cast %83 : vector<128xf32> to vector<1x128xf32>
    %85 = arith.mulf %81, %84 : vector<1x128xf32>
    %cst_34 = arith.constant 1.000000e-16 : f32
    %86 = vector.broadcast %cst_34 : f32 to vector<1x128xf32>
    %87 = arith.maximumf %85, %86 : vector<1x128xf32>
    %88 = math.rsqrt %87 : vector<1x128xf32>
    %89 = arith.mulf %78, %88 : vector<1x128xf32>
    %90 = vector.extract_strided_slice %4 {offsets = [1, 0], sizes = [1, 1], strides = [1, 1]} : vector<4x1xf32> to vector<1x1xf32>
    %91 = vector.broadcast %90 : vector<1x1xf32> to vector<1x128xf32>
    %92 = arith.mulf %91, %73 : vector<1x128xf32>
    %93 = vector.extract_strided_slice %9 {offsets = [1, 0], sizes = [1, 1], strides = [1, 1]} : vector<4x1xf32> to vector<1x1xf32>
    %94 = vector.broadcast %93 : vector<1x1xf32> to vector<1x128xf32>
    %95 = arith.mulf %94, %89 : vector<1x128xf32>
    %96 = arith.addf %92, %95 : vector<1x128xf32>
    %c1_35 = arith.constant 1 : index
    %c0_36 = arith.constant 0 : index
    %97 = vector.load %arg12[%c1_35, %c0_36] : memref<4x128xf32, #tpu.memory_space<vmem>>, vector<1x128xf32>
    tpu.vector_store %arg12[%c1_35, %c0_36], %96 {strides = array<i32>} : memref<4x128xf32, #tpu.memory_space<vmem>>, vector<1x128xf32>,
    %c2 = arith.constant 2 : index
    %c0_37 = arith.constant 0 : index
    %c0_38 = arith.constant 0 : index
    %98 = vector.load %arg1[%c2, %c0_37, %c0_38] : memref<4x32x128xf32, #tpu.memory_space<vmem>>, vector<1x32x128xf32>
    %99 = vector.shape_cast %98 : vector<1x32x128xf32> to vector<32x128xf32>
    %c2_39 = arith.constant 2 : index
    %c0_40 = arith.constant 0 : index
    %c0_41 = arith.constant 0 : index
    %100 = vector.load %arg2[%c2_39, %c0_40, %c0_41] : memref<4x32x128xf32, #tpu.memory_space<vmem>>, vector<1x32x128xf32>
    %101 = vector.shape_cast %100 : vector<1x32x128xf32> to vector<32x128xf32>
    %102 = vector.extract_strided_slice %99 {offsets = [0, 0], sizes = [16, 128], strides = [1, 1]} : vector<32x128xf32> to vector<16x128xf32>
    %103 = vector.extract_strided_slice %101 {offsets = [0, 0], sizes = [16, 128], strides = [1, 1]} : vector<32x128xf32> to vector<16x128xf32>
    %104 = arith.mulf %102, %103 : vector<16x128xf32>
    %cst_42 = arith.constant dense<0.000000e+00> : vector<128xf32>
    %105 = vector.multi_reduction <add>, %104, %cst_42 [0] : vector<16x128xf32> to vector<128xf32>
    %106 = vector.shape_cast %105 : vector<128xf32> to vector<1x128xf32>
    %107 = arith.mulf %102, %102 : vector<16x128xf32>
    %cst_43 = arith.constant dense<0.000000e+00> : vector<128xf32>
    %108 = vector.multi_reduction <add>, %107, %cst_43 [0] : vector<16x128xf32> to vector<128xf32>
    %109 = vector.shape_cast %108 : vector<128xf32> to vector<1x128xf32>
    %110 = arith.mulf %103, %103 : vector<16x128xf32>
    %cst_44 = arith.constant dense<0.000000e+00> : vector<128xf32>
    %111 = vector.multi_reduction <add>, %110, %cst_44 [0] : vector<16x128xf32> to vector<128xf32>
    %112 = vector.shape_cast %111 : vector<128xf32> to vector<1x128xf32>
    %113 = arith.mulf %109, %112 : vector<1x128xf32>
    %cst_45 = arith.constant 1.000000e-16 : f32
    %114 = vector.broadcast %cst_45 : f32 to vector<1x128xf32>
    %115 = arith.maximumf %113, %114 : vector<1x128xf32>
    %116 = math.rsqrt %115 : vector<1x128xf32>
    %117 = arith.mulf %106, %116 : vector<1x128xf32>
    %118 = vector.extract_strided_slice %99 {offsets = [16, 0], sizes = [16, 128], strides = [1, 1]} : vector<32x128xf32> to vector<16x128xf32>
    %119 = vector.extract_strided_slice %101 {offsets = [16, 0], sizes = [16, 128], strides = [1, 1]} : vector<32x128xf32> to vector<16x128xf32>
    %120 = arith.mulf %118, %119 : vector<16x128xf32>
    %cst_46 = arith.constant dense<0.000000e+00> : vector<128xf32>
    %121 = vector.multi_reduction <add>, %120, %cst_46 [0] : vector<16x128xf32> to vector<128xf32>
    %122 = vector.shape_cast %121 : vector<128xf32> to vector<1x128xf32>
    %123 = arith.mulf %118, %118 : vector<16x128xf32>
    %cst_47 = arith.constant dense<0.000000e+00> : vector<128xf32>
    %124 = vector.multi_reduction <add>, %123, %cst_47 [0] : vector<16x128xf32> to vector<128xf32>
    %125 = vector.shape_cast %124 : vector<128xf32> to vector<1x128xf32>
    %126 = arith.mulf %119, %119 : vector<16x128xf32>
    %cst_48 = arith.constant dense<0.000000e+00> : vector<128xf32>
    %127 = vector.multi_reduction <add>, %126, %cst_48 [0] : vector<16x128xf32> to vector<128xf32>
    %128 = vector.shape_cast %127 : vector<128xf32> to vector<1x128xf32>
    %129 = arith.mulf %125, %128 : vector<1x128xf32>
    %cst_49 = arith.constant 1.000000e-16 : f32
    %130 = vector.broadcast %cst_49 : f32 to vector<1x128xf32>
    %131 = arith.maximumf %129, %130 : vector<1x128xf32>
    %132 = math.rsqrt %131 : vector<1x128xf32>
    %133 = arith.mulf %122, %132 : vector<1x128xf32>
    %134 = vector.extract_strided_slice %4 {offsets = [2, 0], sizes = [1, 1], strides = [1, 1]} : vector<4x1xf32> to vector<1x1xf32>
    %135 = vector.broadcast %134 : vector<1x1xf32> to vector<1x128xf32>
    %136 = arith.mulf %135, %117 : vector<1x128xf32>
    %137 = vector.extract_strided_slice %9 {offsets = [2, 0], sizes = [1, 1], strides = [1, 1]} : vector<4x1xf32> to vector<1x1xf32>
    %138 = vector.broadcast %137 : vector<1x1xf32> to vector<1x128xf32>
    %139 = arith.mulf %138, %133 : vector<1x128xf32>
    %140 = arith.addf %136, %139 : vector<1x128xf32>
    %c2_50 = arith.constant 2 : index
    %c0_51 = arith.constant 0 : index
    %141 = vector.load %arg12[%c2_50, %c0_51] : memref<4x128xf32, #tpu.memory_space<vmem>>, vector<1x128xf32>
    tpu.vector_store %arg12[%c2_50, %c0_51], %140 {strides = array<i32>} : memref<4x128xf32, #tpu.memory_space<vmem>>, vector<1x128xf32>,
    %c3 = arith.constant 3 : index
    %c0_52 = arith.constant 0 : index
    %c0_53 = arith.constant 0 : index
    %142 = vector.load %arg1[%c3, %c0_52, %c0_53] : memref<4x32x128xf32, #tpu.memory_space<vmem>>, vector<1x32x128xf32>
    %143 = vector.shape_cast %142 : vector<1x32x128xf32> to vector<32x128xf32>
    %c3_54 = arith.constant 3 : index
    %c0_55 = arith.constant 0 : index
    %c0_56 = arith.constant 0 : index
    %144 = vector.load %arg2[%c3_54, %c0_55, %c0_56] : memref<4x32x128xf32, #tpu.memory_space<vmem>>, vector<1x32x128xf32>
    %145 = vector.shape_cast %144 : vector<1x32x128xf32> to vector<32x128xf32>
    %146 = vector.extract_strided_slice %143 {offsets = [0, 0], sizes = [16, 128], strides = [1, 1]} : vector<32x128xf32> to vector<16x128xf32>
    %147 = vector.extract_strided_slice %145 {offsets = [0, 0], sizes = [16, 128], strides = [1, 1]} : vector<32x128xf32> to vector<16x128xf32>
    %148 = arith.mulf %146, %147 : vector<16x128xf32>
    %cst_57 = arith.constant dense<0.000000e+00> : vector<128xf32>
    %149 = vector.multi_reduction <add>, %148, %cst_57 [0] : vector<16x128xf32> to vector<128xf32>
    %150 = vector.shape_cast %149 : vector<128xf32> to vector<1x128xf32>
    %151 = arith.mulf %146, %146 : vector<16x128xf32>
    %cst_58 = arith.constant dense<0.000000e+00> : vector<128xf32>
    %152 = vector.multi_reduction <add>, %151, %cst_58 [0] : vector<16x128xf32> to vector<128xf32>
    %153 = vector.shape_cast %152 : vector<128xf32> to vector<1x128xf32>
    %154 = arith.mulf %147, %147 : vector<16x128xf32>
    %cst_59 = arith.constant dense<0.000000e+00> : vector<128xf32>
    %155 = vector.multi_reduction <add>, %154, %cst_59 [0] : vector<16x128xf32> to vector<128xf32>
    %156 = vector.shape_cast %155 : vector<128xf32> to vector<1x128xf32>
    %157 = arith.mulf %153, %156 : vector<1x128xf32>
    %cst_60 = arith.constant 1.000000e-16 : f32
    %158 = vector.broadcast %cst_60 : f32 to vector<1x128xf32>
    %159 = arith.maximumf %157, %158 : vector<1x128xf32>
    %160 = math.rsqrt %159 : vector<1x128xf32>
    %161 = arith.mulf %150, %160 : vector<1x128xf32>
    %162 = vector.extract_strided_slice %143 {offsets = [16, 0], sizes = [16, 128], strides = [1, 1]} : vector<32x128xf32> to vector<16x128xf32>
    %163 = vector.extract_strided_slice %145 {offsets = [16, 0], sizes = [16, 128], strides = [1, 1]} : vector<32x128xf32> to vector<16x128xf32>
    %164 = arith.mulf %162, %163 : vector<16x128xf32>
    %cst_61 = arith.constant dense<0.000000e+00> : vector<128xf32>
    %165 = vector.multi_reduction <add>, %164, %cst_61 [0] : vector<16x128xf32> to vector<128xf32>
    %166 = vector.shape_cast %165 : vector<128xf32> to vector<1x128xf32>
    %167 = arith.mulf %162, %162 : vector<16x128xf32>
    %cst_62 = arith.constant dense<0.000000e+00> : vector<128xf32>
    %168 = vector.multi_reduction <add>, %167, %cst_62 [0] : vector<16x128xf32> to vector<128xf32>
    %169 = vector.shape_cast %168 : vector<128xf32> to vector<1x128xf32>
    %170 = arith.mulf %163, %163 : vector<16x128xf32>
    %cst_63 = arith.constant dense<0.000000e+00> : vector<128xf32>
    %171 = vector.multi_reduction <add>, %170, %cst_63 [0] : vector<16x128xf32> to vector<128xf32>
    %172 = vector.shape_cast %171 : vector<128xf32> to vector<1x128xf32>
    %173 = arith.mulf %169, %172 : vector<1x128xf32>
    %cst_64 = arith.constant 1.000000e-16 : f32
    %174 = vector.broadcast %cst_64 : f32 to vector<1x128xf32>
    %175 = arith.maximumf %173, %174 : vector<1x128xf32>
    %176 = math.rsqrt %175 : vector<1x128xf32>
    %177 = arith.mulf %166, %176 : vector<1x128xf32>
    %178 = vector.extract_strided_slice %4 {offsets = [3, 0], sizes = [1, 1], strides = [1, 1]} : vector<4x1xf32> to vector<1x1xf32>
    %179 = vector.broadcast %178 : vector<1x1xf32> to vector<1x128xf32>
    %180 = arith.mulf %179, %161 : vector<1x128xf32>
    %181 = vector.extract_strided_slice %9 {offsets = [3, 0], sizes = [1, 1], strides = [1, 1]} : vector<4x1xf32> to vector<1x1xf32>
    %182 = vector.broadcast %181 : vector<1x1xf32> to vector<1x128xf32>
    %183 = arith.mulf %182, %177 : vector<1x128xf32>
    %184 = arith.addf %180, %183 : vector<1x128xf32>
    %c3_65 = arith.constant 3 : index
    %c0_66 = arith.constant 0 : index
    %185 = vector.load %arg12[%c3_65, %c0_66] : memref<4x128xf32, #tpu.memory_space<vmem>>, vector<1x128xf32>
    tpu.vector_store %arg12[%c3_65, %c0_66], %184 {strides = array<i32>} : memref<4x128xf32, #tpu.memory_space<vmem>>, vector<1x128xf32>,
    %c0_67 = arith.constant 0 : index
    %c0_68 = arith.constant 0 : index
    %186 = vector.load %arg12[%c0_67, %c0_68] : memref<4x128xf32, #tpu.memory_space<vmem>>, vector<4x128xf32>
    %c0_69 = arith.constant 0 : index
    %c0_70 = arith.constant 0 : index
    %187 = vector.load %arg5[%c0_69, %c0_70] : memref<32x4xf32, #tpu.memory_space<vmem>>, vector<32x4xf32>
    %c0_71 = arith.constant 0 : index
    %c0_72 = arith.constant 0 : index
    %188 = vector.load %arg6[%c0_71, %c0_72] : memref<32x1xf32, #tpu.memory_space<vmem>>, vector<32x1xf32>
    %cst_73 = arith.constant dense<0.000000e+00> : vector<32x128xf32>
    %189 = tpu.matmul %187, %186, %cst_73 {dimension_numbers = #tpu.dot_dimension_numbers<[1], [0], [0], [1], [0, 0, 1, 1], [], []>} : vector<32x4xf32>, vector<4x128xf32>, vector<32x128xf32> -> vector<32x128xf32>
    %190 = vector.broadcast %188 : vector<32x1xf32> to vector<32x128xf32>
    %191 = arith.addf %189, %190 : vector<32x128xf32>
    %cst_74 = arith.constant 0.000000e+00 : f32
    %192 = vector.broadcast %cst_74 : f32 to vector<32x128xf32>
    %193 = arith.maximumf %191, %192 : vector<32x128xf32>
    %c0_75 = arith.constant 0 : index
    %c0_76 = arith.constant 0 : index
    %194 = vector.load %arg7[%c0_75, %c0_76] : memref<16x32xf32, #tpu.memory_space<vmem>>, vector<16x32xf32>
    %c0_77 = arith.constant 0 : index
    %c0_78 = arith.constant 0 : index
    %195 = vector.load %arg8[%c0_77, %c0_78] : memref<16x1xf32, #tpu.memory_space<vmem>>, vector<16x1xf32>
    %cst_79 = arith.constant dense<0.000000e+00> : vector<16x128xf32>
    %196 = tpu.matmul %194, %193, %cst_79 {dimension_numbers = #tpu.dot_dimension_numbers<[1], [0], [0], [1], [0, 0, 1, 1], [], []>} : vector<16x32xf32>, vector<32x128xf32>, vector<16x128xf32> -> vector<16x128xf32>
    %197 = vector.broadcast %195 : vector<16x1xf32> to vector<16x128xf32>
    %198 = arith.addf %196, %197 : vector<16x128xf32>
    %cst_80 = arith.constant 0.000000e+00 : f32
    %199 = vector.broadcast %cst_80 : f32 to vector<16x128xf32>
    %200 = arith.maximumf %198, %199 : vector<16x128xf32>
    %c0_81 = arith.constant 0 : index
    %c0_82 = arith.constant 0 : index
    %201 = vector.load %arg9[%c0_81, %c0_82] : memref<1x16xf32, #tpu.memory_space<vmem>>, vector<1x16xf32>
    %c0_83 = arith.constant 0 : index
    %c0_84 = arith.constant 0 : index
    %202 = vector.load %arg10[%c0_83, %c0_84] : memref<1x1xf32, #tpu.memory_space<vmem>>, vector<1x1xf32>
    %cst_85 = arith.constant dense<0.000000e+00> : vector<1x128xf32>
    %203 = tpu.matmul %201, %200, %cst_85 {dimension_numbers = #tpu.dot_dimension_numbers<[1], [0], [0], [1], [0, 0, 1, 1], [], []>} : vector<1x16xf32>, vector<16x128xf32>, vector<1x128xf32> -> vector<1x128xf32>
    %204 = vector.broadcast %202 : vector<1x1xf32> to vector<1x128xf32>
    %205 = arith.addf %203, %204 : vector<1x128xf32>
    %c0_86 = arith.constant 0 : index
    %c0_87 = arith.constant 0 : index
    %206 = vector.load %arg11[%c0_86, %c0_87] : memref<1x128xf32, #tpu.memory_space<vmem>>, vector<1x128xf32>
    tpu.vector_store %arg11[%c0_86, %c0_87], %205 {strides = array<i32>} : memref<1x128xf32, #tpu.memory_space<vmem>>, vector<1x128xf32>,
    return
  }
  func.func @transform_0(%arg0: i32) -> (i32, i32, i32) {
    %c0_i32 = arith.constant 0 : i32
    %c0_i32_0 = arith.constant 0 : i32
    %c0_i32_1 = arith.constant 0 : i32
    return %c0_i32, %c0_i32_0, %arg0 : i32, i32, i32
  }
  func.func @transform_1(%arg0: i32) -> (i32, i32, i32) {
    %c0_i32 = arith.constant 0 : i32
    %c0_i32_0 = arith.constant 0 : i32
    %c0_i32_1 = arith.constant 0 : i32
    return %c0_i32, %c0_i32_0, %arg0 : i32, i32, i32
  }
  func.func @transform_2(%arg0: i32) -> (i32, i32) {
    %c0_i32 = arith.constant 0 : i32
    %c0_i32_0 = arith.constant 0 : i32
    %c0_i32_1 = arith.constant 0 : i32
    return %c0_i32, %c0_i32_0 : i32, i32
  }
  func.func @transform_3(%arg0: i32) -> (i32, i32) {
    %c0_i32 = arith.constant 0 : i32
    %c0_i32_0 = arith.constant 0 : i32
    %c0_i32_1 = arith.constant 0 : i32
    return %c0_i32, %c0_i32_0 : i32, i32
  }
  func.func @transform_4(%arg0: i32) -> (i32, i32) {
    %c0_i32 = arith.constant 0 : i32
    %c0_i32_0 = arith.constant 0 : i32
    %c0_i32_1 = arith.constant 0 : i32
    return %c0_i32, %c0_i32_0 : i32, i32
  }
  func.func @transform_5(%arg0: i32) -> (i32, i32) {
    %c0_i32 = arith.constant 0 : i32
    %c0_i32_0 = arith.constant 0 : i32
    %c0_i32_1 = arith.constant 0 : i32
    return %c0_i32, %c0_i32_0 : i32, i32
  }
  func.func @transform_6(%arg0: i32) -> (i32, i32) {
    %c0_i32 = arith.constant 0 : i32
    %c0_i32_0 = arith.constant 0 : i32
    %c0_i32_1 = arith.constant 0 : i32
    return %c0_i32, %c0_i32_0 : i32, i32
  }
  func.func @transform_7(%arg0: i32) -> (i32, i32) {
    %c0_i32 = arith.constant 0 : i32
    %c0_i32_0 = arith.constant 0 : i32
    %c0_i32_1 = arith.constant 0 : i32
    return %c0_i32, %c0_i32_0 : i32, i32
  }
  func.func @transform_8(%arg0: i32) -> (i32, i32) {
    %c0_i32 = arith.constant 0 : i32
    %c0_i32_0 = arith.constant 0 : i32
    %c0_i32_1 = arith.constant 0 : i32
    return %c0_i32, %c0_i32_0 : i32, i32
  }
  func.func @transform_9(%arg0: i32) -> (i32, i32) {
    %c0_i32 = arith.constant 0 : i32
    %c0_i32_0 = arith.constant 0 : i32
    %c0_i32_1 = arith.constant 0 : i32
    return %c0_i32, %c0_i32_0 : i32, i32
  }
  func.func @transform_10(%arg0: i32) -> (i32, i32) {
    %c0_i32 = arith.constant 0 : i32
    %c0_i32_0 = arith.constant 0 : i32
    return %c0_i32, %arg0 : i32, i32
  }
}

</mosaic_0001>

<bundles_post_ra>
// kernel: mlp_mia_white_weight_sim2_m_forward.1
= control target key start
LH: loop header
LB: loop body
LE: loop exit
PB: predicated region body
PF: predicated region fallthrough
CT: control target
= control target key end

     0   :  { %vm38_vm0 = vcmask 19456   ;;  %vm380_vm1 = vcmask 31744   ;;  %v767_v8 = vmov 0   ;;  %vm393_vm2 = vcmask 1043456   ;;  %s1107_s2 = inlined_call_operand.vmem [shape: f32[4,3], index: 2, kind: input, shape index: {}]   ;;  %s1108_s3 = inlined_call_operand.vmem [shape: f32[4,3], index: 3, kind: input, shape index: {}]   ;;  %s1109_s4 = inlined_call_operand.vmem [shape: f32[32,4], index: 4, kind: input, shape index: {}]   ;;  %s1110_s5 = inlined_call_operand.vmem [shape: f32[32,1], index: 5, kind: input, shape index: {}]   ;;  %s1111_s0 = inlined_call_operand.vmem [shape: f32[4,32,128], index: 0, kind: input, shape index: {}]   ;;  %s1112_s9 = inlined_call_operand.<no memory space> [shape: f32[1,1], index: 9, kind: input, shape index: {}]   ;;  %s1113_s1 = inlined_call_operand.vmem [shape: f32[4,32,128], index: 1, kind: input, shape index: {}]   ;;  %s1114_s7 = inlined_call_operand.vmem [shape: f32[16,1], index: 7, kind: input, shape index: {}]   ;;  %s1115_s6 = inlined_call_operand.vmem [shape: f32[16,32], index: 6, kind: input, shape index: {}]   ;;  %s1116_s8 = inlined_call_operand.vmem [shape: f32[1,16], index: 8, kind: input, shape index: {}]   ;;  %s1117_s10 = inlined_call_operand.vmem [shape: f32[1,128], index: 10, kind: output, shape index: {}]  }
   0x1   :  { %v37_v0 = vld [vmem:[%s1107_s2] sm:$0xf]  ;;  %v359_v5 = vld [vmem:[%s1110_s5 + $0x18] sm:$0xff]  ;;  %v357_v6 = vld [vmem:[%s1110_s5 + $0x8] sm:$0xff]  ;;  %749 = vset.pattern.permute.xlu1 %v767_v8  ;;  %v15_v9 = vstv %s1112_s9  ;;  %750 = vset.pattern.permute.xlu0 %v767_v8  ;;  %vm500_vm3 = vcmask 261120   ;;  %vm769_vm4 = vmmov 0  }
   0x2   :  { %v44_v1 = vld [vmem:[%s1108_s3] sm:$0xf]  ;;  %v39_v2 = vsel %vm38_vm0, %v37_v0, 0.0  ;;  %v50_v10 = vld [vmem:[%s1111_s0 + $0x8] sm:$0xff]  ;;  %377 = vperm.xlu1 %749, %v359_v5   ;;  %16 = vst [vmem:[#allocation3] sm:$0x1] %v15_v9 }
   0x3   :  { %40 = vadd.xlane.f32.xlu0 %v39_v2  ;;  %v45_v3 = vsel %vm38_vm0, %v44_v1, 0.0  ;;  %v352_v4 = vld [vmem:[%s1109_s4] sm:$0xff]  ;;  %v54_v12 = vld [vmem:[%s1113_s1 + $0x8] sm:$0xff]  ;;  %v358_v15 = vld [vmem:[%s1110_s5 + $0x10] sm:$0xff]  ;;  %v67_v17 = vmul.f32 %v50_v10, %v50_v10  ;;  %vm595_vm5 = vcmask 130048  }
   0x4   :  { %v49_v7 = vld [vmem:[%s1111_s0] sm:$0xff]  ;;  %722 = vmatprep.mubr.msk.f32.mxu0 %vm380_vm1, %v352_v4  ;;  %v675_v14 = vld [vmem:[%s1111_s0 + $0x28] sm:$0xff]  ;;  %v76_v19 = vmul.f32 %v54_v12, %v54_v12  ;;  %v58_v44 = vmul.f32 %v54_v12, %v50_v10  ;;  %v927_v62 = vld [vmem:[%s1111_s0 + $0x10] sm:$0xff] }
   0x5   :  { %v53_v11 = vld [vmem:[%s1113_s1] sm:$0xff]  ;;  %v66_v16 = vmul.f32 %v49_v7, %v49_v7  ;;  %v143_v21 = vmul.f32 %v675_v14, %v675_v14  ;;  %v679_v24 = vld [vmem:[%s1113_s1 + $0x28] sm:$0xff]  ;;  %v932_v63 = vld [vmem:[%s1111_s0 + $0x18] sm:$0xff] }
   0x6   :  { %v674_v13 = vld [vmem:[%s1111_s0 + $0x20] sm:$0xff]  ;;  %v75_v18 = vmul.f32 %v53_v11, %v53_v11  ;;  %372 = vperm.xlu1 %749, %v358_v15   ;;  %v152_v29 = vmul.f32 %v679_v24, %v679_v24  ;;  %v489_v30 = vld [vmem:[%s1114_s7 + $0x8] sm:$0xff]  ;;  %v57_v43 = vmul.f32 %v53_v11, %v49_v7  ;;  %v134_v51 = vmul.f32 %v679_v24, %v675_v14  ;;  %v937_v0 = vld [vmem:[%s1113_s1 + $0x10] sm:$0xff] }
   0x7   :  { %46 = vadd.xlane.f32.xlu0 %v45_v3  ;;  %v142_v20 = vmul.f32 %v674_v13, %v674_v13  ;;  %v356_v22 = vld [vmem:[%s1110_s5] sm:$0xff]  ;;  %v68_v25 = vadd.f32 %v67_v17, %v66_v16  ;;  %v683_v32 = vld [vmem:[%s1111_s0 + $0x48] sm:$0xff]  ;;  %v942_v1 = vld [vmem:[%s1113_s1 + $0x18] sm:$0xff]  ;;  %v98_v24 = vmul.f32 %v932_v63, %v932_v63 }
   0x8   :  { %v678_v23 = vld [vmem:[%s1113_s1 + $0x20] sm:$0xff]  ;;  %v77_v26 = vadd.f32 %v76_v19, %v75_v18  ;;  %v219_v38 = vmul.f32 %v683_v32, %v683_v32  ;;  %v687_v41 = vld [vmem:[%s1113_s1 + $0x48] sm:$0xff]  ;;  %v944_v2 = vadd.f32 %v58_v44, %v57_v43  ;;  %v960_v7 = vld [vmem:[%s1111_s0 + $0x38] sm:$0xff] }
   0x9   :  { %v144_v27 = vadd.f32 %v143_v21, %v142_v20  ;;  %v151_v28 = vmul.f32 %v678_v23, %v678_v23  ;;  %v682_v31 = vld [vmem:[%s1111_s0 + $0x40] sm:$0xff]  ;;  %v69_v33 = vrot.slane %v68_v25, 4  ;;  %v133_v45 = vmul.f32 %v678_v23, %v674_v13  ;;  %v900_v46 = vld [vmem:[%s1111_s0 + $0x68] sm:$0xff]  ;;  %v965_v8 = vld [vmem:[%s1113_s1 + $0x30] sm:$0xff] }
   0xa   :  { %362 = vperm.xlu1 %749, %v356_v22   ;;  %v78_v34 = vrot.slane %v77_v26, 4  ;;  %v218_v37 = vmul.f32 %v682_v31, %v682_v31  ;;  %v488_v39 = vld [vmem:[%s1114_s7] sm:$0xff]  ;;  %v910_v48 = vld [vmem:[%s1113_s1 + $0x68] sm:$0xff]  ;;  %v228_v56 = vmul.f32 %v687_v41, %v687_v41  ;;  %v295_v59 = vmul.f32 %v900_v46, %v900_v46  ;;  %1124 = vst [vmem:[#allocation4_spill] sm:$0xff] %v944_v2  ;;  %v972_v13 = vld [vmem:[%s1113_s1 + $0x38] sm:$0xff] }
   0xb   :  { %v145_v35 = vrot.slane %v144_v27, 4  ;;  %v153_v36 = vadd.f32 %v152_v29, %v151_v28  ;;  %v686_v40 = vld [vmem:[%s1113_s1 + $0x40] sm:$0xff]  ;;  %v70_v49 = vadd.f32 %v69_v33, %v68_v25  ;;  %v304_v61 = vmul.f32 %v910_v48, %v910_v48  ;;  %v977_v14 = vld [vmem:[%s1111_s0 + $0x50] sm:$0xff]  ;;  %v982_v15 = vld [vmem:[%s1111_s0 + $0x58] sm:$0xff] }
   0xc   :  { %v895_v42 = vld [vmem:[%s1111_s0 + $0x60] sm:$0xff]  ;;  %v912_v50 = vadd.f32 %v78_v34, %v77_v26  ;;  %v220_v54 = vadd.f32 %v219_v38, %v218_v37  ;;  %v227_v55 = vmul.f32 %v686_v40, %v686_v40  ;;  %v946_v3 = vadd.f32 %v134_v51, %v133_v45  ;;  %v987_v20 = vld [vmem:[%s1113_s1 + $0x50] sm:$0xff]  ;;  %v992_v21 = vld [vmem:[%s1113_s1 + $0x58] sm:$0xff] }
   0xd   :  { %v905_v47 = vld [vmem:[%s1113_s1 + $0x60] sm:$0xff]  ;;  %v914_v52 = vadd.f32 %v145_v35, %v144_v27  ;;  %v154_v53 = vrot.slane %v153_v36, 4  ;;  %v294_v58 = vmul.f32 %v895_v42, %v895_v42  ;;  %v948_v4 = vmul.f32 %v686_v40, %v682_v31  ;;  %v997_v22 = vld [vmem:[%s1111_s0 + $0x70] sm:$0xff]  ;;  %v1010_v27 = vld [vmem:[%s1111_s0 + $0x78] sm:$0xff] }
   0xe   :  { %497 = vperm.xlu1 %749, %v489_v30   ;;  %v585_v57 = vld [vmem:[#allocation3] sm:$0x1]  ;;  %v303_v60 = vmul.f32 %v905_v47, %v905_v47  ;;  %1125 = vst [vmem:[#allocation5_spill] sm:$0xff] %v946_v3  ;;  %v950_v5 = vmul.f32 %v687_v41, %v683_v32  ;;  %v71_v9 = vrot.slane %v70_v49, 2  ;;  %v80_v10 = vrot.slane %v912_v50, 2  ;;  %1126 = vst [vmem:[#allocation6_spill] sm:$0xff] %v997_v22 }
   0xf   :  { %v147_v11 = vrot.slane %v914_v52, 2  ;;  %v155_v12 = vadd.f32 %v154_v53, %v153_v36  ;;  %v221_v16 = vrot.slane %v220_v54, 4  ;;  %v229_v17 = vadd.f32 %v228_v56, %v227_v55  ;;  %1127 = vst [vmem:[#allocation7_spill] sm:$0xff] %v1010_v27  ;;  %v1015_v28 = vld [vmem:[%s1113_s1 + $0x70] sm:$0xff]  ;;  %v1020_v29 = vld [vmem:[%s1113_s1 + $0x78] sm:$0xff] }
  0x10   :  { %v296_v18 = vadd.f32 %v295_v59, %v294_v58  ;;  %v305_v19 = vadd.f32 %v304_v61, %v303_v60  ;;  %v97_v23 = vmul.f32 %v927_v62, %v927_v62  ;;  %v106_v25 = vmul.f32 %v937_v0, %v937_v0  ;;  %1128 = vst [vmem:[#allocation8_spill] sm:$0xff] %v1015_v28 }
  0x11   :  { %v107_v26 = vmul.f32 %v942_v1, %v942_v1  ;;  %1129 = vst [vmem:[#allocation9_spill] sm:$0xff] %v1020_v29  ;;  %v174_v31 = vmul.f32 %v960_v7, %v960_v7  ;;  %v182_v32 = vmul.f32 %v965_v8, %v965_v8  ;;  %v183_v33 = vmul.f32 %v972_v13, %v972_v13 }
  0x12   :  { %492 = vperm.xlu1 %749, %v488_v39   ;;  %v249_v34 = vmul.f32 %v977_v14, %v977_v14  ;;  %v250_v35 = vmul.f32 %v982_v15, %v982_v15  ;;  %v258_v36 = vmul.f32 %v987_v20, %v987_v20  ;;  %v259_v37 = vmul.f32 %v992_v21, %v992_v21 }
  0x13   :  { %v325_v38 = vmul.f32 %v997_v22, %v997_v22  ;;  %v326_v39 = vmul.f32 %v1010_v27, %v1010_v27  ;;  %v334_v40 = vmul.f32 %v1015_v28, %v1015_v28  ;;  %v335_v41 = vmul.f32 %v1020_v29, %v1020_v29 }
  0x14   :  { %v72_v43 = vadd.f32 %v71_v9, %v70_v49  ;;  %v230_v44 = vrot.slane %v229_v17, 4  ;;  %v99_v45 = vadd.f32 %v98_v24, %v97_v23  ;;  %v108_v51 = vadd.f32 %v107_v26, %v106_v25 }
  0x15   :  { %v297_v53 = vrot.slane %v296_v18, 4  ;;  %v306_v55 = vrot.slane %v305_v19, 4  ;;  %v81_v58 = vadd.f32 %v80_v10, %v912_v50  ;;  %v222_v59 = vadd.f32 %v221_v16, %v220_v54 }
  0x16   :  { %588 = vperm.xlu1 %749, %v585_v57   ;;  %v184_v57 = vadd.f32 %v183_v33, %v182_v32  ;;  %v251_v60 = vadd.f32 %v250_v35, %v249_v34  ;;  %v260_v61 = vadd.f32 %v259_v37, %v258_v36  ;;  %v148_v3 = vadd.f32 %v147_v11, %v914_v52 }
  0x17   :  { %v156_v2 = vrot.slane %v155_v12, 2  ;;  %v327_v27 = vadd.f32 %v326_v39, %v325_v38  ;;  %v336_v28 = vadd.f32 %v335_v41, %v334_v40  ;;  %v73_v22 = vrot.slane %v72_v43, 1 }
  0x18   :  { %v231_v29 = vadd.f32 %v230_v44, %v229_v17  ;;  %v100_v49 = vrot.slane %v99_v45, 4  ;;  %v109_v9 = vrot.slane %v108_v51, 4  ;;  %v298_v23 = vadd.f32 %v297_v53, %v296_v18 }
  0x19   :  { %v307_v24 = vadd.f32 %v306_v55, %v305_v19  ;;  %v185_v26 = vrot.slane %v184_v57, 4  ;;  %v252_v32 = vrot.slane %v251_v60, 4  ;;  %v261_v50 = vrot.slane %v260_v61, 4 }
  0x1a   :  { %v149_v54 = vrot.slane %v148_v3, 1  ;;  %v157_v10 = vadd.f32 %v156_v2, %v155_v12  ;;  %v328_v16 = vrot.slane %v327_v27, 4  ;;  %v337_v33 = vrot.slane %v336_v28, 4 }
  0x1b   :  { %v74_v52 = vadd.f32 %v73_v22, %v72_v43  ;;  %v232_v11 = vrot.slane %v231_v29, 2  ;;  %v101_v34 = vadd.f32 %v100_v49, %v99_v45  ;;  %v110_v35 = vadd.f32 %v109_v9, %v108_v51 }
  0x1c   :  { %v299_v36 = vrot.slane %v298_v23, 2  ;;  %v308_v17 = vrot.slane %v307_v24, 2  ;;  %v186_v38 = vadd.f32 %v185_v26, %v184_v57  ;;  %v253_v39 = vadd.f32 %v252_v32, %v251_v60 }
  0x1d   :  { %367 = vperm.xlu0 %750, %v357_v6   ;;  %v955_v6 = vld [vmem:[%s1111_s0 + $0x30] sm:$0xff]  ;;  %v262_v40 = vadd.f32 %v261_v50, %v260_v61  ;;  %v158_v41 = vrot.slane %v157_v10, 1  ;;  %v1050_v44 = vadd.f32 %v950_v5, %v948_v4  ;;  %v329_v2 = vadd.f32 %v328_v16, %v327_v27 }
  0x1e   :  { %v173_v30 = vmul.f32 %v955_v6, %v955_v6  ;;  %v338_v12 = vadd.f32 %v337_v33, %v336_v28  ;;  %v150_v53 = vadd.f32 %v149_v54, %v148_v3  ;;  %v233_v22 = vadd.f32 %v232_v11, %v231_v29 }
  0x1f   :  { %v102_v43 = vrot.slane %v101_v34, 2  ;;  %v111_v45 = vrot.slane %v110_v35, 2  ;;  %v300_v51 = vadd.f32 %v299_v36, %v298_v23  ;;  %v309_v55 = vadd.f32 %v308_v17, %v307_v24  ;;  %v1132_v17 = vld [vmem:[#allocation7_spill] sm:$0xff] }
  0x20   :  { %v175_v56 = vadd.f32 %v174_v31, %v173_v30  ;;  %v82_v30 = vrot.slane %v81_v58, 1  ;;  %v223_v31 = vrot.slane %v222_v59, 2  ;;  %v263_v60 = vrot.slane %v262_v40, 2 }
  0x21   :  { %v159_v61 = vadd.f32 %v158_v41, %v157_v10  ;;  %v285_v4 = vmul.f32 %v905_v47, %v895_v42  ;;  %v330_v5 = vrot.slane %v329_v2, 2  ;;  %v339_v27 = vrot.slane %v338_v12, 2 }
  0x22   :  { %v176_v25 = vrot.slane %v175_v56, 4  ;;  %v83_v18 = vadd.f32 %v82_v30, %v81_v58  ;;  %v224_v19 = vadd.f32 %v223_v31, %v222_v59  ;;  %v254_v59 = vrot.slane %v253_v39, 2 }
  0x23   :  { %v234_v28 = vrot.slane %v233_v22, 1  ;;  %v286_v3 = vmul.f32 %v910_v48, %v900_v46  ;;  %v103_v29 = vadd.f32 %v102_v43, %v101_v34  ;;  %v112_v9 = vadd.f32 %v111_v45, %v110_v35  ;;  %v1131_v35 = vld [vmem:[#allocation8_spill] sm:$0xff] }
  0x24   :  { %v177_v37 = vadd.f32 %v176_v25, %v175_v56  ;;  %v187_v56 = vrot.slane %v186_v38, 2  ;;  %v1052_v57 = vmul.f32 %v83_v18, %v74_v52  ;;  %v225_v58 = vrot.slane %v224_v19, 1 }
  0x25   :  { %v301_v23 = vrot.slane %v300_v51, 1  ;;  %v310_v24 = vrot.slane %v309_v55, 1  ;;  %v88_v31 = vmul.f32 %v937_v0, %v927_v62  ;;  %v255_v32 = vadd.f32 %v254_v59, %v253_v39 }
  0x26   :  { %v178_v49 = vrot.slane %v177_v37, 2  ;;  %v188_v26 = vadd.f32 %v187_v56, %v186_v38  ;;  %v226_v30 = vadd.f32 %v225_v58, %v224_v19  ;;  %v264_v50 = vadd.f32 %v263_v60, %v262_v40 }
  0x27   :  { %v89_v42 = vmul.f32 %v942_v1, %v932_v63  ;;  %v164_v47 = vmul.f32 %v965_v8, %v955_v6  ;;  %v331_v54 = vadd.f32 %v330_v5, %v329_v2  ;;  %v340_v46 = vadd.f32 %v339_v27, %v338_v12  ;;  %v1130_v8 = vld [vmem:[#allocation6_spill] sm:$0xff] }
  0x28   :  { %v179_v25 = vadd.f32 %v178_v49, %v177_v37  ;;  %v235_v48 = vadd.f32 %v234_v28, %v233_v22  ;;  %v104_v10 = vrot.slane %v103_v29, 1  ;;  %v113_v16 = vrot.slane %v112_v9, 1  ;;  %v1133_v37 = vld [vmem:[#allocation9_spill] sm:$0xff]  ;;  %v1134_v49 = vld [vmem:[#allocation4_spill] sm:$0xff] }
  0x29   :  { %v165_v33 = vmul.f32 %v972_v13, %v960_v7  ;;  %v302_v52 = vadd.f32 %v301_v23, %v300_v51  ;;  %v311_v11 = vadd.f32 %v310_v24, %v309_v55  ;;  %v189_v62 = vrot.slane %v188_v26, 1 }
  0x2a   :  { %v180_v34 = vrot.slane %v179_v25, 1  ;;  %v240_v0 = vmul.f32 %v987_v20, %v977_v14  ;;  %v241_v63 = vmul.f32 %v992_v21, %v982_v15  ;;  %v256_v1 = vrot.slane %v255_v32, 1 }
  0x2b   :  { %v265_v6 = vrot.slane %v264_v50, 1  ;;  %v316_v36 = vmul.f32 %v1131_v35, %v1130_v8  ;;  %v317_v38 = vmul.f32 %v1133_v37, %v1132_v17  ;;  %v332_v18 = vrot.slane %v331_v54, 1 }
  0x2c   :  { %v341_v7 = vrot.slane %v340_v46, 1  ;;  %v160_v13 = vmul.f32 %v159_v61, %v150_v53  ;;  %v287_v19 = vadd.f32 %v286_v3, %v285_v4  ;;  %v105_v39 = vadd.f32 %v104_v10, %v103_v29  ;;  %v1135_v53 = vld [vmem:[#allocation5_spill] sm:$0xff] }
  0x2d   :  { %v114_v40 = vadd.f32 %v113_v16, %v112_v9  ;;  %v90_v41 = vadd.f32 %v89_v42, %v88_v31  ;;  %v166_v2 = vadd.f32 %v165_v33, %v164_v47  ;;  %v181_v14 = vadd.f32 %v180_v34, %v179_v25 }
  0x2e   :  { %v190_v20 = vadd.f32 %v189_v62, %v188_v26  ;;  %v236_v12 = vmul.f32 %v235_v48, %v226_v30  ;;  %v312_v15 = vmul.f32 %v311_v11, %v302_v52  ;;  %v257_v21 = vadd.f32 %v256_v1, %v255_v32 }
  0x2f   :  { %v266_v22 = vadd.f32 %v265_v6, %v264_v50  ;;  %v242_v43 = vadd.f32 %v241_v63, %v240_v0  ;;  %v318_v45 = vadd.f32 %v317_v38, %v316_v36  ;;  %v333_v51 = vadd.f32 %v332_v18, %v331_v54 }
  0x30   :  { %v342_v55 = vadd.f32 %v341_v7, %v340_v46  ;;  %v60_v56 = vrot.slane %v1134_v49, 4  ;;  %v85_v58 = vmax.f32 %v1052_v57, 1e-16  ;;  %v136_v59 = vrot.slane %v1135_v53, 4 }
  0x31   :  { %v115_v60 = vmul.f32 %v114_v40, %v105_v39  ;;  %v161_v61 = vmax.f32 %v160_v13, 1e-16  ;;  %v212_v4 = vrot.slane %v1050_v44, 4  ;;  %v288_v5 = vrot.slane %v287_v19, 4 }
  0x32   :  { %v191_v27 = vmul.f32 %v190_v20, %v181_v14  ;;  %v237_v28 = vmax.f32 %v236_v12, 1e-16  ;;  %v91_v3 = vrot.slane %v90_v41, 4  ;;  %v167_v29 = vrot.slane %v166_v2, 4 }
  0x33   :  { %v267_v9 = vmul.f32 %v266_v22, %v257_v21  ;;  %v313_v23 = vmax.f32 %v312_v15, 1e-16  ;;  %v243_v24 = vrot.slane %v242_v43, 4  ;;  %v319_v25 = vrot.slane %v318_v45, 4 }
  0x34   :  { %v343_v26 = vmul.f32 %v342_v55, %v333_v51  ;;  %v61_v30 = vadd.f32 %v60_v56, %v1134_v49  ;;  %751 = vrsqrt.f32 %v85_v58  ;;  %v137_v57 = vadd.f32 %v136_v59, %v1135_v53 }
  0x35   :  { %v116_v31 = vmax.f32 %v115_v60, 1e-16  ;;  %753 = vrsqrt.f32 %v161_v61  ;;  %v213_v32 = vadd.f32 %v212_v4, %v1050_v44  ;;  %v289_v50 = vadd.f32 %v288_v5, %v287_v19 }
  0x36   :  { %v192_v42 = vmax.f32 %v191_v27, 1e-16  ;;  %755 = vrsqrt.f32 %v237_v28  ;;  %v92_v47 = vadd.f32 %v91_v3, %v90_v41  ;;  %v168_v54 = vadd.f32 %v167_v29, %v166_v2 }
  0x37   :  { %v268_v46 = vmax.f32 %v267_v9, 1e-16  ;;  %757 = vrsqrt.f32 %v313_v23  ;;  %v244_v48 = vadd.f32 %v243_v24, %v242_v43  ;;  %v320_v10 = vadd.f32 %v319_v25, %v318_v45 }
  0x38   :  { %v344_v16 = vmax.f32 %v343_v26, 1e-16  ;;  %759 = vrsqrt.f32 %v116_v31  ;;  %v62_v33 = vrot.slane %v61_v30, 2  ;;  %v138_v52 = vrot.slane %v137_v57, 2 }
  0x39   :  { %761 = vrsqrt.f32 %v192_v42  ;;  %v214_v11 = vrot.slane %v213_v32, 2  ;;  %v290_v34 = vrot.slane %v289_v50, 2  ;;  %v93_v62 = vrot.slane %v92_v47, 2 }
  0x3a   :  { %763 = vrsqrt.f32 %v268_v46  ;;  %v169_v0 = vrot.slane %v168_v54, 2  ;;  %v245_v44 = vrot.slane %v244_v48, 2  ;;  %v321_v63 = vrot.slane %v320_v10, 2 }
  0x3b   :  { %765 = vrsqrt.f32 %v344_v16  ;;  %v63_v1 = vadd.f32 %v62_v33, %v61_v30  ;;  %v139_v6 = vadd.f32 %v138_v52, %v137_v57  ;;  %v215_v8 = vadd.f32 %v214_v11, %v213_v32  ;;  %v353_v52 = vld [vmem:[%s1109_s4 + $0x8] sm:$0xff]  ;;  %v354_v11 = vld [vmem:[%s1109_s4 + $0x10] sm:$0xff] }
  0x3c   :  { %v291_v35 = vadd.f32 %v290_v34, %v289_v50  ;;  %v94_v36 = vadd.f32 %v93_v62, %v92_v47  ;;  %v170_v17 = vadd.f32 %v169_v0, %v168_v54  ;;  %v246_v37 = vadd.f32 %v245_v44, %v244_v48  ;;  %v355_v34 = vld [vmem:[%s1109_s4 + $0x18] sm:$0xff]  ;;  %v486_v62 = vld [vmem:[%s1115_s6] sm:$0xff] }
  0x3d   :  { %v322_v38 = vadd.f32 %v321_v63, %v320_v10  ;;  %v64_v7 = vrot.slane %v63_v1, 1  ;;  %v140_v19 = vrot.slane %v139_v6, 1  ;;  %v216_v39 = vrot.slane %v215_v8, 1  ;;  %736 = vmatprep.mubr.msk.f32.mxu1 %vm500_vm3, %v486_v62 }
  0x3e   :  { %v292_v40 = vrot.slane %v291_v35, 1  ;;  %v95_v2 = vrot.slane %v94_v36, 1  ;;  %v171_v14 = vrot.slane %v170_v17, 1  ;;  %v247_v20 = vrot.slane %v246_v37, 1 }
  0x3f   :  { %v323_v12 = vrot.slane %v322_v38, 1  ;;  %v65_v22 = vadd.f32 %v64_v7, %v63_v1  ;;  %v141_v45 = vadd.f32 %v140_v19, %v139_v6  ;;  %v217_v51 = vadd.f32 %v216_v39, %v215_v8 }
  0x40   :  { %v293_v55 = vadd.f32 %v292_v40, %v291_v35  ;;  %v96_v56 = vadd.f32 %v95_v2, %v94_v36  ;;  %v172_v58 = vadd.f32 %v171_v14, %v170_v17  ;;  %v248_v53 = vadd.f32 %v247_v20, %v246_v37  ;;  %v487_v40 = vld [vmem:[%s1115_s6 + $0x8] sm:$0xff] }
  0x41   :  { %v752_v18 = vpop.eup %751  ;;  %v324_v59 = vadd.f32 %v323_v12, %v322_v38 }
  0x42   :  { %v754_v13 = vpop.eup %753  ;;  %v87_v4 = vmul.f32 %v752_v18, %v65_v22 }
  0x43   :  { %v756_v41 = vpop.eup %755  ;;  %v163_v27 = vmul.f32 %v754_v13, %v141_v45  ;;  %v584_v45 = vld [vmem:[%s1116_s8] sm:$0x1] }
  0x44   :  { %v758_v15 = vpop.eup %757  ;;  %v239_v28 = vmul.f32 %v756_v41, %v217_v51  ;;  %v768_v41 = vmov 0.0   ;;  %v591_v51 = vlaneseq }
  0x45   :  { %v760_v21 = vpop.eup %759  ;;  %v315_v3 = vmul.f32 %v758_v15, %v293_v55 }
  0x46   :  { %v762_v43 = vpop.eup %761  ;;  %v118_v29 = vmul.f32 %v760_v21, %v96_v56  ;;  %v592_v55 = vshrl.u32 %v591_v51, 7 }
  0x47   :  { %v764_v49 = vpop.eup %763  ;;  %v194_v9 = vmul.f32 %v762_v43, %v172_v58 }
  0x48   :  { %v766_v60 = vpop.eup %765  ;;  %v270_v23 = vmul.f32 %v764_v49, %v248_v53  ;;  %v593_v49 = vsub.s32 0, %v592_v55 }
  0x49   :  { %v346_v24 = vmul.f32 %v766_v60, %v324_v59 }
  0x7d   :  { %v378_v0 = vpop.permute.xlu1 %377 }
  0x81   :  { %v373_v63 = vpop.permute.xlu1 %372 }
  0x85   :  { %v363_v18 = vpop.permute.xlu1 %362 }
  0x89   :  { %v498_v2 = vpop.permute.xlu1 %497 }
  0x8c   :  { %v41_v61 = vpop.xlane.xlu0 %40 }
  0x8d   :  { %v43_v5 = vmul.f32 0.33333334, %v41_v61  ;;  %v493_v12 = vpop.permute.xlu1 %492 }
  0x8f   :  { %v119_v30 = vmul.f32 %v87_v4, %v43_v5  ;;  %v195_v57 = vmul.f32 %v163_v27, %v43_v5  ;;  %v271_v31 = vmul.f32 %v239_v28, %v43_v5  ;;  %v347_v32 = vmul.f32 %v315_v3, %v43_v5 }
  0x90   :  { %v47_v25 = vpop.xlane.xlu0 %46 }
  0x91   :  { %v48_v26 = vmul.f32 0.33333334, %v47_v25  ;;  %v589_v56 = vpop.permute.xlu1 %588 }
  0x92   :  { %v594_v58 = vrot.slane %v589_v56, %v593_v49 }
  0x93   :  { %v120_v50 = vmul.f32 %v118_v29, %v48_v26  ;;  %v196_v42 = vmul.f32 %v194_v9, %v48_v26  ;;  %v272_v47 = vmul.f32 %v270_v23, %v48_v26  ;;  %v348_v54 = vmul.f32 %v346_v24, %v48_v26 }
  0x95   :  { %v121_v46 = vadd.f32 %v120_v50, %v119_v30  ;;  %v197_v48 = vadd.f32 %v196_v42, %v195_v57  ;;  %v273_v10 = vadd.f32 %v272_v47, %v271_v31  ;;  %v349_v16 = vadd.f32 %v348_v54, %v347_v32 }
  0x97   :  { %122 = vst [vmem:[#allocation2] sm:$0x1] %v121_v46  ;;  %198 = vst [vmem:[#allocation2] sm:$0x2] %v197_v48 }
  0x98   :  { %274 = vst [vmem:[#allocation2] sm:$0x4] %v273_v10  ;;  %350 = vst [vmem:[#allocation2] sm:$0x8] %v349_v16  ;;  %v368_v6 = vpop.permute.xlu0 %367 }
  0x9f   :  { %v351_v33 = vld [vmem:[#allocation2] sm:$0xf] }
  0xa0   :  { %720 = vmatprep.subr.msk.mxu0 %vm393_vm2, %v351_v33 }
  0xa1   :  { %721 = vmatpush3.msk.msra.mxu0 %vm393_vm2, %v351_v33 }
  0xa2   :  { %723 = vmatmul.mubr.msk.f32.vlgmr.msra.gmra.mxu0 %vm380_vm1, %v353_v52  ;;  %739 = vmatprep.subr.mxu0 %v768_v41 }
  0xa3   :  { %725 = vmatprep.mubr.msk.f32.mxu0 %vm380_vm1, %v354_v11 }
  0xa6   :  { %726 = vmatmul.mubr.msk.f32.gmra.mxu0 %vm380_vm1, %v355_v34 }
  0xa7   :  { %743 = vmatprep.mubr.msk.f32.mxu0 %vm769_vm4, %v768_v41 }
 0x162   :  { %v724_v44 = vpop.f32.mrf.mxu0 }
 0x163   :  { %v469_v17 = vadd.f32 %v724_v44, %v368_v6 }
 0x164   :  { %v463_v1 = vpop.f32.mrf.mxu0 }
 0x165   :  { %v464_v7 = vadd.f32 %v463_v1, %v363_v18  ;;  %v483_v19 = vmax.f32 %v469_v17, 0.0 }
 0x166   :  { %v727_v8 = vpop.f32.mrf.mxu0 }
 0x167   :  { %v479_v35 = vadd.f32 %v727_v8, %v378_v0  ;;  %v482_v39 = vmax.f32 %v464_v7, 0.0 }
 0x168   :  { %v473_v36 = vpop.f32.mrf.mxu0 }
 0x169   :  { %v485_v37 = vmax.f32 %v479_v35, 0.0  ;;  %v474_v38 = vadd.f32 %v473_v36, %v373_v63 }
 0x16b   :  { %v484_v13 = vmax.f32 %v474_v38, 0.0  ;;  %728 = vmatprep.subr.mxu1 %v485_v37 }
 0x16c   :  { %729 = vmatpush3.msra.mxu1 %v485_v37 }
 0x16d   :  { %730 = vmatprep.subr.mxu1 %v484_v13 }
 0x16e   :  { %731 = vmatpush3.msra.mxu1 %v484_v13 }
 0x16f   :  { %732 = vmatprep.subr.mxu1 %v483_v19 }
 0x170   :  { %733 = vmatpush3.msra.mxu1 %v483_v19 }
 0x171   :  { %734 = vmatprep.subr.mxu1 %v482_v39 }
 0x172   :  { %735 = vmatpush3.msra.mxu1 %v482_v39 }
 0x173   :  { %737 = vmatmul.mubr.msk.f32.vlgmr.msra.gmra.mxu1 %vm500_vm3, %v487_v40 }
 0x233   :  { %v738_v14 = vpop.f32.mrf.mxu1 }
 0x234   :  { %v579_v20 = vadd.f32 %v738_v14, %v498_v2 }
 0x235   :  { %v573_v15 = vpop.f32.mrf.mxu1 }
 0x236   :  { %v583_v21 = vmax.f32 %v579_v20, 0.0  ;;  %v574_v22 = vadd.f32 %v573_v15, %v493_v12 }
 0x238   :  { %v582_v43 = vmax.f32 %v574_v22, 0.0  ;;  %740 = vmatpush3.msra.mxu0 %v583_v21 }
 0x239   :  { %741 = vmatprep.subr.mxu0 %v768_v41 }
 0x23a   :  { %742 = vmatpush3.msra.mxu0 %v582_v43 }
 0x23b   :  { %744 = vmatmul.mubr.msk.f32.vlgmr.msra.gmra.mxu0 %vm595_vm5, %v584_v45 }
 0x2fb   :  { %v665_v53 = vpop.f32.mrf.mxu0 }
 0x2fc   :  { %v666_v59 = vadd.f32 %v665_v53, %v594_v58 }
 0x2fd   :  { %v745_v60 = vpop.f32.mrf.mxu0 }
 0x2fe   :  { %669 = vst [vmem:[%s1117_s10] sm:$0x1] %v666_v59 }

</bundles_post_ra>
